<compile_context>
chip_gen: v5e
topology: v5e:2x2
jax: 0.10.0
libtpu: 0.0.40
codegen_flags: <defaults>
</compile_context>

<pallas_src>
import jax
import jax.numpy as jnp
from jax.experimental import pallas as pl
from jax.experimental.pallas import tpu as pltpu


INPUT_SIZE = 4
HIDDEN_SIZE = 40


# --------------------------------------------------------------------------
# Fused 3-layer GAT encoder kernel (one grid step per batch graph)
# --------------------------------------------------------------------------
def _encoder_kernel(x_ref, adj_ref,
                    w1_ref, al1_ref, ar1_ref, b1_ref,
                    w2_ref, al2_ref, ar2_ref, b2_ref,
                    w3_ref, al3_ref, ar3_ref, b3_ref,
                    out_ref):
    # Boolean edge mask computed once, reused by all three layers.
    adj_pos = adj_ref[0] > 0.0                       # (N_dst, N_src)

    def gat(x, w_ref, al_ref, ar_ref, b_ref):
        # DGL GATConv, num_heads=1: fc (no bias) -> attn scores -> leaky_relu
        # -> edge_softmax over incoming edges -> aggregate -> + bias.
        z = jnp.dot(x, w_ref[...], preferred_element_type=jnp.float32)     # (N, H)
        el = jnp.sum(z * al_ref[...], axis=-1, keepdims=True)              # (N, 1) src score
        er = jnp.sum(z * ar_ref[...], axis=-1, keepdims=True)              # (N, 1) dst score
        e = er + el.T                                                       # e[dst, src]
        e = jnp.maximum(e, 0.2 * e)                                         # leaky_relu(0.2)
        e_m = jnp.where(adj_pos, e, jnp.float32(-1e30))
        m = jnp.max(e_m, axis=-1, keepdims=True)
        p = jnp.where(adj_pos, jnp.exp(e_m - m), 0.0)
        denom = jnp.sum(p, axis=-1, keepdims=True)
        alpha = p / jnp.maximum(denom, 1e-30)       # zero-in-degree rows -> all zeros
        return jnp.dot(alpha, z, preferred_element_type=jnp.float32) + b_ref[...]

    h = gat(x_ref[0], w1_ref, al1_ref, ar1_ref, b1_ref)   # layer 1: Fin -> H
    h = gat(h, w2_ref, al2_ref, ar2_ref, b2_ref)          # layer 2: H -> H
    out_ref[0] = gat(h, w3_ref, al3_ref, ar3_ref, b3_ref)  # layer 3: H -> H


def encoder_net(x, adj, params):
    """x: (B, N, Fin), adj: (B, N, N), params: list of 3 layer dicts."""
    B, N, Fin = x.shape
    H = params[0]["w"].shape[1]

    const2d = lambda b: (0, 0)
    in_specs = [
        pl.BlockSpec((1, N, Fin), lambda b: (b, 0, 0)),
        pl.BlockSpec((1, N, N), lambda b: (b, 0, 0)),
    ]
    flat_weights = []
    for lp in params:
        in_specs += [
            pl.BlockSpec(lp["w"].shape, const2d),
            pl.BlockSpec((1, H), const2d),
            pl.BlockSpec((1, H), const2d),
            pl.BlockSpec((1, H), const2d),
        ]
        flat_weights += [lp["w"], lp["al"], lp["ar"], lp["b"]]

    return pl.pallas_call(
        _encoder_kernel,
        out_shape=jax.ShapeDtypeStruct((B, N, H), jnp.float32),
        grid_spec=pltpu.PrefetchScalarGridSpec(
            num_scalar_prefetch=0,
            grid=(B,),
            in_specs=in_specs,
            out_specs=pl.BlockSpec((1, N, H), lambda b: (b, 0, 0)),
        ),
        compiler_params=pltpu.CompilerParams(dimension_semantics=("parallel",)),
    )(x, adj, *flat_weights)


# --------------------------------------------------------------------------
# Parameters (deterministic synthetic init)
# --------------------------------------------------------------------------
def init_params(key, input_size=INPUT_SIZE, hidden_size=HIDDEN_SIZE):
    H = hidden_size

    def w(k, shape, scale=0.1):
        return scale * jax.random.normal(k, shape, dtype=jnp.float32)

    def gat_params(k, fin):
        k1, k2, k3, k4 = jax.random.split(k, 4)
        return {"w": w(k1, (fin, H)),        # GATConv.fc weight (pre-transposed)
                "al": w(k2, (1, H)),         # attn_l
                "ar": w(k3, (1, H)),         # attn_r
                "b": w(k4, (1, H), 0.05)}    # bias

    k1, k2, k3 = jax.random.split(key, 3)
    return [gat_params(k1, input_size), gat_params(k2, H), gat_params(k3, H)]


# --------------------------------------------------------------------------
# Pure-JAX reference (same dense formulation) for a correctness check
# --------------------------------------------------------------------------
def _gat_ref(x, adj, lp):
    hi = jax.lax.Precision.HIGHEST
    z = jnp.dot(x, lp["w"], precision=hi)                                   # (B, N, H)
    el = jnp.sum(z * lp["al"], axis=-1, keepdims=True)                      # (B, N, 1)
    er = jnp.sum(z * lp["ar"], axis=-1, keepdims=True)                      # (B, N, 1)
    e = er + jnp.swapaxes(el, -1, -2)                                       # (B, Nd, Ns)
    e = jnp.where(e > 0, e, 0.2 * e)
    e_m = jnp.where(adj > 0, e, -1e30)
    m = jnp.max(e_m, axis=-1, keepdims=True)
    p = jnp.where(adj > 0, jnp.exp(e_m - m), 0.0)
    denom = jnp.sum(p, axis=-1, keepdims=True)
    alpha = p / jnp.maximum(denom, 1e-30)
    return jnp.einsum("bij,bjh->bih", alpha, z, precision=hi) + lp["b"]


def encoder_ref(x, adj, params):
    h = x
    for lp in params:
        h = _gat_ref(h, adj, lp)
    return h


# --------------------------------------------------------------------------
if __name__ == "__main__":
    key = jax.random.PRNGKey(0)
    k1, k2 = jax.random.split(key, 2)

    B, N = 2, 23                                     # small graph, batch of 2
    x = jax.random.normal(k1, (B, N, INPUT_SIZE), dtype=jnp.float32)
    adj = jnp.maximum(
        (jax.random.uniform(k2, (B, N, N)) < 0.3).astype(jnp.float32),
        jnp.eye(N, dtype=jnp.float32)[None])          # include self-loops

    params = init_params(jax.random.PRNGKey(1))

    fwd = jax.jit(encoder_net)
    out = fwd(x, adj, params)
    jax.block_until_ready(out)

    assert out.shape == (B, N, HIDDEN_SIZE)
    assert bool(jnp.all(jnp.isfinite(out)))

    ref = encoder_ref(x, adj, params)
    assert bool(jnp.allclose(out, ref, atol=1e-3, rtol=1e-3)), \
        float(jnp.max(jnp.abs(out - ref)))

    print("KERNEL_OK")
</pallas_src>

<mosaic_0001>
module attributes {stable_mosaic.version = 11 : i64} {
  func.func @_encoder_kernel(%arg0: i32, %arg1: memref<1x23x4xf32, #tpu.memory_space<vmem>>, %arg2: memref<1x23x23xf32, #tpu.memory_space<vmem>>, %arg3: memref<4x40xf32, #tpu.memory_space<vmem>>, %arg4: memref<1x40xf32, #tpu.memory_space<vmem>>, %arg5: memref<1x40xf32, #tpu.memory_space<vmem>>, %arg6: memref<1x40xf32, #tpu.memory_space<vmem>>, %arg7: memref<40x40xf32, #tpu.memory_space<vmem>>, %arg8: memref<1x40xf32, #tpu.memory_space<vmem>>, %arg9: memref<1x40xf32, #tpu.memory_space<vmem>>, %arg10: memref<1x40xf32, #tpu.memory_space<vmem>>, %arg11: memref<40x40xf32, #tpu.memory_space<vmem>>, %arg12: memref<1x40xf32, #tpu.memory_space<vmem>>, %arg13: memref<1x40xf32, #tpu.memory_space<vmem>>, %arg14: memref<1x40xf32, #tpu.memory_space<vmem>>, %arg15: memref<1x23x40xf32, #tpu.memory_space<vmem>>) attributes {dimension_semantics = [#tpu.dimension_semantics<parallel>], iteration_bounds = array<i64: 2>, scalar_prefetch = 0 : i64, scratch_operands = 0 : i64, tpu.core_type = #tpu.core_type<tc>, window_params = [{transform_indices = @transform_0, window_bounds = array<i64: 1, 23, 4>}, {transform_indices = @transform_1, window_bounds = array<i64: 1, 23, 23>}, {pipeline_mode = #tpu.pipeline_mode<synchronous>, transform_indices = @transform_2, window_bounds = array<i64: 4, 40>}, {pipeline_mode = #tpu.pipeline_mode<synchronous>, transform_indices = @transform_3, window_bounds = array<i64: 1, 40>}, {pipeline_mode = #tpu.pipeline_mode<synchronous>, transform_indices = @transform_4, window_bounds = array<i64: 1, 40>}, {pipeline_mode = #tpu.pipeline_mode<synchronous>, transform_indices = @transform_5, window_bounds = array<i64: 1, 40>}, {pipeline_mode = #tpu.pipeline_mode<synchronous>, transform_indices = @transform_6, window_bounds = array<i64: 40, 40>}, {pipeline_mode = #tpu.pipeline_mode<synchronous>, transform_indices = @transform_7, window_bounds = array<i64: 1, 40>}, {pipeline_mode = #tpu.pipeline_mode<synchronous>, transform_indices = @transform_8, window_bounds = array<i64: 1, 40>}, {pipeline_mode = #tpu.pipeline_mode<synchronous>, transform_indices = @transform_9, window_bounds = array<i64: 1, 40>}, {pipeline_mode = #tpu.pipeline_mode<synchronous>, transform_indices = @transform_10, window_bounds = array<i64: 40, 40>}, {pipeline_mode = #tpu.pipeline_mode<synchronous>, transform_indices = @transform_11, window_bounds = array<i64: 1, 40>}, {pipeline_mode = #tpu.pipeline_mode<synchronous>, transform_indices = @transform_12, window_bounds = array<i64: 1, 40>}, {pipeline_mode = #tpu.pipeline_mode<synchronous>, transform_indices = @transform_13, window_bounds = array<i64: 1, 40>}, {transform_indices = @transform_14, window_bounds = array<i64: 1, 23, 40>}]} {
    %c0 = arith.constant 0 : index
    %c0_0 = arith.constant 0 : index
    %c0_1 = arith.constant 0 : index
    %0 = vector.load %arg2[%c0, %c0_0, %c0_1] : memref<1x23x23xf32, #tpu.memory_space<vmem>>, vector<1x23x23xf32>
    %1 = vector.shape_cast %0 : vector<1x23x23xf32> to vector<23x23xf32>
    %cst = arith.constant 0.000000e+00 : f32
    %2 = vector.broadcast %cst : f32 to vector<23x23xf32>
    %3 = arith.cmpf ogt, %1, %2 : vector<23x23xf32>
    %c0_2 = arith.constant 0 : index
    %c0_3 = arith.constant 0 : index
    %c0_4 = arith.constant 0 : index
    %4 = vector.load %arg1[%c0_2, %c0_3, %c0_4] : memref<1x23x4xf32, #tpu.memory_space<vmem>>, vector<1x23x4xf32>
    %5 = vector.shape_cast %4 : vector<1x23x4xf32> to vector<23x4xf32>
    %c0_5 = arith.constant 0 : index
    %c0_6 = arith.constant 0 : index
    %6 = vector.load %arg3[%c0_5, %c0_6] : memref<4x40xf32, #tpu.memory_space<vmem>>, vector<4x40xf32>
    %cst_7 = arith.constant dense<0.000000e+00> : vector<23x40xf32>
    %7 = tpu.matmul %5, %6, %cst_7 {dimension_numbers = #tpu.dot_dimension_numbers<[1], [0], [0], [1], [0, 0, 1, 1], [], []>} : vector<23x4xf32>, vector<4x40xf32>, vector<23x40xf32> -> vector<23x40xf32>
    %c0_8 = arith.constant 0 : index
    %c0_9 = arith.constant 0 : index
    %8 = vector.load %arg4[%c0_8, %c0_9] : memref<1x40xf32, #tpu.memory_space<vmem>>, vector<1x40xf32>
    %9 = vector.broadcast %8 : vector<1x40xf32> to vector<23x40xf32>
    %10 = arith.mulf %7, %9 : vector<23x40xf32>
    %cst_10 = arith.constant dense<0.000000e+00> : vector<23xf32>
    %11 = vector.multi_reduction <add>, %10, %cst_10 [1] : vector<23x40xf32> to vector<23xf32>
    %12 = vector.shape_cast %11 : vector<23xf32> to vector<23x1xf32>
    %c0_11 = arith.constant 0 : index
    %c0_12 = arith.constant 0 : index
    %13 = vector.load %arg5[%c0_11, %c0_12] : memref<1x40xf32, #tpu.memory_space<vmem>>, vector<1x40xf32>
    %14 = vector.broadcast %13 : vector<1x40xf32> to vector<23x40xf32>
    %15 = arith.mulf %7, %14 : vector<23x40xf32>
    %cst_13 = arith.constant dense<0.000000e+00> : vector<23xf32>
    %16 = vector.multi_reduction <add>, %15, %cst_13 [1] : vector<23x40xf32> to vector<23xf32>
    %17 = vector.shape_cast %16 : vector<23xf32> to vector<23x1xf32>
    %18 = tpu.transpose %12, [1, 0] : vector<23x1xf32> -> vector<1x23xf32>
    %19 = vector.broadcast %17 : vector<23x1xf32> to vector<23x23xf32>
    %20 = vector.broadcast %18 : vector<1x23xf32> to vector<23x23xf32>
    %21 = arith.addf %19, %20 : vector<23x23xf32>
    %cst_14 = arith.constant 2.000000e-01 : f32
    %22 = vector.broadcast %cst_14 : f32 to vector<23x23xf32>
    %23 = arith.mulf %22, %21 : vector<23x23xf32>
    %24 = arith.maximumf %21, %23 : vector<23x23xf32>
    %cst_15 = arith.constant -1.000000e+30 : f32
    %25 = vector.broadcast %cst_15 : f32 to vector<23x23xf32>
    %26 = arith.select %3, %24, %25 : vector<23x23xi1>, vector<23x23xf32>
    %cst_16 = arith.constant dense<0xFF800000> : vector<23xf32>
    %27 = vector.multi_reduction <maximumf>, %26, %cst_16 [1] : vector<23x23xf32> to vector<23xf32>
    %28 = vector.shape_cast %27 : vector<23xf32> to vector<23x1xf32>
    %29 = vector.broadcast %28 : vector<23x1xf32> to vector<23x23xf32>
    %30 = arith.subf %26, %29 : vector<23x23xf32>
    %31 = math.exp %30 : vector<23x23xf32>
    %cst_17 = arith.constant 0.000000e+00 : f32
    %32 = vector.broadcast %cst_17 : f32 to vector<23x23xf32>
    %33 = arith.select %3, %31, %32 : vector<23x23xi1>, vector<23x23xf32>
    %cst_18 = arith.constant dense<0.000000e+00> : vector<23xf32>
    %34 = vector.multi_reduction <add>, %33, %cst_18 [1] : vector<23x23xf32> to vector<23xf32>
    %35 = vector.shape_cast %34 : vector<23xf32> to vector<23x1xf32>
    %cst_19 = arith.constant 1.000000e-30 : f32
    %36 = vector.broadcast %cst_19 : f32 to vector<23x1xf32>
    %37 = arith.maximumf %35, %36 : vector<23x1xf32>
    %38 = vector.broadcast %37 : vector<23x1xf32> to vector<23x23xf32>
    %39 = arith.divf %33, %38 : vector<23x23xf32>
    %cst_20 = arith.constant dense<0.000000e+00> : vector<23x40xf32>
    %40 = tpu.matmul %39, %7, %cst_20 {dimension_numbers = #tpu.dot_dimension_numbers<[1], [0], [0], [1], [0, 0, 1, 1], [], []>} : vector<23x23xf32>, vector<23x40xf32>, vector<23x40xf32> -> vector<23x40xf32>
    %c0_21 = arith.constant 0 : index
    %c0_22 = arith.constant 0 : index
    %41 = vector.load %arg6[%c0_21, %c0_22] : memref<1x40xf32, #tpu.memory_space<vmem>>, vector<1x40xf32>
    %42 = vector.broadcast %41 : vector<1x40xf32> to vector<23x40xf32>
    %43 = arith.addf %40, %42 : vector<23x40xf32>
    %c0_23 = arith.constant 0 : index
    %c0_24 = arith.constant 0 : index
    %44 = vector.load %arg7[%c0_23, %c0_24] : memref<40x40xf32, #tpu.memory_space<vmem>>, vector<40x40xf32>
    %cst_25 = arith.constant dense<0.000000e+00> : vector<23x40xf32>
    %45 = tpu.matmul %43, %44, %cst_25 {dimension_numbers = #tpu.dot_dimension_numbers<[1], [0], [0], [1], [0, 0, 1, 1], [], []>} : vector<23x40xf32>, vector<40x40xf32>, vector<23x40xf32> -> vector<23x40xf32>
    %c0_26 = arith.constant 0 : index
    %c0_27 = arith.constant 0 : index
    %46 = vector.load %arg8[%c0_26, %c0_27] : memref<1x40xf32, #tpu.memory_space<vmem>>, vector<1x40xf32>
    %47 = vector.broadcast %46 : vector<1x40xf32> to vector<23x40xf32>
    %48 = arith.mulf %45, %47 : vector<23x40xf32>
    %cst_28 = arith.constant dense<0.000000e+00> : vector<23xf32>
    %49 = vector.multi_reduction <add>, %48, %cst_28 [1] : vector<23x40xf32> to vector<23xf32>
    %50 = vector.shape_cast %49 : vector<23xf32> to vector<23x1xf32>
    %c0_29 = arith.constant 0 : index
    %c0_30 = arith.constant 0 : index
    %51 = vector.load %arg9[%c0_29, %c0_30] : memref<1x40xf32, #tpu.memory_space<vmem>>, vector<1x40xf32>
    %52 = vector.broadcast %51 : vector<1x40xf32> to vector<23x40xf32>
    %53 = arith.mulf %45, %52 : vector<23x40xf32>
    %cst_31 = arith.constant dense<0.000000e+00> : vector<23xf32>
    %54 = vector.multi_reduction <add>, %53, %cst_31 [1] : vector<23x40xf32> to vector<23xf32>
    %55 = vector.shape_cast %54 : vector<23xf32> to vector<23x1xf32>
    %56 = tpu.transpose %50, [1, 0] : vector<23x1xf32> -> vector<1x23xf32>
    %57 = vector.broadcast %55 : vector<23x1xf32> to vector<23x23xf32>
    %58 = vector.broadcast %56 : vector<1x23xf32> to vector<23x23xf32>
    %59 = arith.addf %57, %58 : vector<23x23xf32>
    %cst_32 = arith.constant 2.000000e-01 : f32
    %60 = vector.broadcast %cst_32 : f32 to vector<23x23xf32>
    %61 = arith.mulf %60, %59 : vector<23x23xf32>
    %62 = arith.maximumf %59, %61 : vector<23x23xf32>
    %cst_33 = arith.constant -1.000000e+30 : f32
    %63 = vector.broadcast %cst_33 : f32 to vector<23x23xf32>
    %64 = arith.select %3, %62, %63 : vector<23x23xi1>, vector<23x23xf32>
    %cst_34 = arith.constant dense<0xFF800000> : vector<23xf32>
    %65 = vector.multi_reduction <maximumf>, %64, %cst_34 [1] : vector<23x23xf32> to vector<23xf32>
    %66 = vector.shape_cast %65 : vector<23xf32> to vector<23x1xf32>
    %67 = vector.broadcast %66 : vector<23x1xf32> to vector<23x23xf32>
    %68 = arith.subf %64, %67 : vector<23x23xf32>
    %69 = math.exp %68 : vector<23x23xf32>
    %cst_35 = arith.constant 0.000000e+00 : f32
    %70 = vector.broadcast %cst_35 : f32 to vector<23x23xf32>
    %71 = arith.select %3, %69, %70 : vector<23x23xi1>, vector<23x23xf32>
    %cst_36 = arith.constant dense<0.000000e+00> : vector<23xf32>
    %72 = vector.multi_reduction <add>, %71, %cst_36 [1] : vector<23x23xf32> to vector<23xf32>
    %73 = vector.shape_cast %72 : vector<23xf32> to vector<23x1xf32>
    %cst_37 = arith.constant 1.000000e-30 : f32
    %74 = vector.broadcast %cst_37 : f32 to vector<23x1xf32>
    %75 = arith.maximumf %73, %74 : vector<23x1xf32>
    %76 = vector.broadcast %75 : vector<23x1xf32> to vector<23x23xf32>
    %77 = arith.divf %71, %76 : vector<23x23xf32>
    %cst_38 = arith.constant dense<0.000000e+00> : vector<23x40xf32>
    %78 = tpu.matmul %77, %45, %cst_38 {dimension_numbers = #tpu.dot_dimension_numbers<[1], [0], [0], [1], [0, 0, 1, 1], [], []>} : vector<23x23xf32>, vector<23x40xf32>, vector<23x40xf32> -> vector<23x40xf32>
    %c0_39 = arith.constant 0 : index
    %c0_40 = arith.constant 0 : index
    %79 = vector.load %arg10[%c0_39, %c0_40] : memref<1x40xf32, #tpu.memory_space<vmem>>, vector<1x40xf32>
    %80 = vector.broadcast %79 : vector<1x40xf32> to vector<23x40xf32>
    %81 = arith.addf %78, %80 : vector<23x40xf32>
    %c0_41 = arith.constant 0 : index
    %c0_42 = arith.constant 0 : index
    %82 = vector.load %arg11[%c0_41, %c0_42] : memref<40x40xf32, #tpu.memory_space<vmem>>, vector<40x40xf32>
    %cst_43 = arith.constant dense<0.000000e+00> : vector<23x40xf32>
    %83 = tpu.matmul %81, %82, %cst_43 {dimension_numbers = #tpu.dot_dimension_numbers<[1], [0], [0], [1], [0, 0, 1, 1], [], []>} : vector<23x40xf32>, vector<40x40xf32>, vector<23x40xf32> -> vector<23x40xf32>
    %c0_44 = arith.constant 0 : index
    %c0_45 = arith.constant 0 : index
    %84 = vector.load %arg12[%c0_44, %c0_45] : memref<1x40xf32, #tpu.memory_space<vmem>>, vector<1x40xf32>
    %85 = vector.broadcast %84 : vector<1x40xf32> to vector<23x40xf32>
    %86 = arith.mulf %83, %85 : vector<23x40xf32>
    %cst_46 = arith.constant dense<0.000000e+00> : vector<23xf32>
    %87 = vector.multi_reduction <add>, %86, %cst_46 [1] : vector<23x40xf32> to vector<23xf32>
    %88 = vector.shape_cast %87 : vector<23xf32> to vector<23x1xf32>
    %c0_47 = arith.constant 0 : index
    %c0_48 = arith.constant 0 : index
    %89 = vector.load %arg13[%c0_47, %c0_48] : memref<1x40xf32, #tpu.memory_space<vmem>>, vector<1x40xf32>
    %90 = vector.broadcast %89 : vector<1x40xf32> to vector<23x40xf32>
    %91 = arith.mulf %83, %90 : vector<23x40xf32>
    %cst_49 = arith.constant dense<0.000000e+00> : vector<23xf32>
    %92 = vector.multi_reduction <add>, %91, %cst_49 [1] : vector<23x40xf32> to vector<23xf32>
    %93 = vector.shape_cast %92 : vector<23xf32> to vector<23x1xf32>
    %94 = tpu.transpose %88, [1, 0] : vector<23x1xf32> -> vector<1x23xf32>
    %95 = vector.broadcast %93 : vector<23x1xf32> to vector<23x23xf32>
    %96 = vector.broadcast %94 : vector<1x23xf32> to vector<23x23xf32>
    %97 = arith.addf %95, %96 : vector<23x23xf32>
    %cst_50 = arith.constant 2.000000e-01 : f32
    %98 = vector.broadcast %cst_50 : f32 to vector<23x23xf32>
    %99 = arith.mulf %98, %97 : vector<23x23xf32>
    %100 = arith.maximumf %97, %99 : vector<23x23xf32>
    %cst_51 = arith.constant -1.000000e+30 : f32
    %101 = vector.broadcast %cst_51 : f32 to vector<23x23xf32>
    %102 = arith.select %3, %100, %101 : vector<23x23xi1>, vector<23x23xf32>
    %cst_52 = arith.constant dense<0xFF800000> : vector<23xf32>
    %103 = vector.multi_reduction <maximumf>, %102, %cst_52 [1] : vector<23x23xf32> to vector<23xf32>
    %104 = vector.shape_cast %103 : vector<23xf32> to vector<23x1xf32>
    %105 = vector.broadcast %104 : vector<23x1xf32> to vector<23x23xf32>
    %106 = arith.subf %102, %105 : vector<23x23xf32>
    %107 = math.exp %106 : vector<23x23xf32>
    %cst_53 = arith.constant 0.000000e+00 : f32
    %108 = vector.broadcast %cst_53 : f32 to vector<23x23xf32>
    %109 = arith.select %3, %107, %108 : vector<23x23xi1>, vector<23x23xf32>
    %cst_54 = arith.constant dense<0.000000e+00> : vector<23xf32>
    %110 = vector.multi_reduction <add>, %109, %cst_54 [1] : vector<23x23xf32> to vector<23xf32>
    %111 = vector.shape_cast %110 : vector<23xf32> to vector<23x1xf32>
    %cst_55 = arith.constant 1.000000e-30 : f32
    %112 = vector.broadcast %cst_55 : f32 to vector<23x1xf32>
    %113 = arith.maximumf %111, %112 : vector<23x1xf32>
    %114 = vector.broadcast %113 : vector<23x1xf32> to vector<23x23xf32>
    %115 = arith.divf %109, %114 : vector<23x23xf32>
    %cst_56 = arith.constant dense<0.000000e+00> : vector<23x40xf32>
    %116 = tpu.matmul %115, %83, %cst_56 {dimension_numbers = #tpu.dot_dimension_numbers<[1], [0], [0], [1], [0, 0, 1, 1], [], []>} : vector<23x23xf32>, vector<23x40xf32>, vector<23x40xf32> -> vector<23x40xf32>
    %c0_57 = arith.constant 0 : index
    %c0_58 = arith.constant 0 : index
    %117 = vector.load %arg14[%c0_57, %c0_58] : memref<1x40xf32, #tpu.memory_space<vmem>>, vector<1x40xf32>
    %118 = vector.broadcast %117 : vector<1x40xf32> to vector<23x40xf32>
    %119 = arith.addf %116, %118 : vector<23x40xf32>
    %c0_59 = arith.constant 0 : index
    %c0_60 = arith.constant 0 : index
    %c0_61 = arith.constant 0 : index
    %120 = vector.load %arg15[%c0_59, %c0_60, %c0_61] : memref<1x23x40xf32, #tpu.memory_space<vmem>>, vector<1x23x40xf32>
    %121 = vector.shape_cast %120 : vector<1x23x40xf32> to vector<23x40xf32>
    %122 = vector.shape_cast %119 : vector<23x40xf32> to vector<1x23x40xf32>
    tpu.vector_store %arg15[%c0_59, %c0_60, %c0_61], %122 {strides = array<i32>} : memref<1x23x40xf32, #tpu.memory_space<vmem>>, vector<1x23x40xf32>,
    return
  }
  func.func @transform_0(%arg0: i32) -> (i32, i32, i32) {
    %c0_i32 = arith.constant 0 : i32
    %c0_i32_0 = arith.constant 0 : i32
    %c0_i32_1 = arith.constant 0 : i32
    return %arg0, %c0_i32, %c0_i32_0 : i32, i32, i32
  }
  func.func @transform_1(%arg0: i32) -> (i32, i32, i32) {
    %c0_i32 = arith.constant 0 : i32
    %c0_i32_0 = arith.constant 0 : i32
    %c0_i32_1 = arith.constant 0 : i32
    return %arg0, %c0_i32, %c0_i32_0 : i32, i32, i32
  }
  func.func @transform_2(%arg0: i32) -> (i32, i32) {
    %c0_i32 = arith.constant 0 : i32
    %c0_i32_0 = arith.constant 0 : i32
    %c0_i32_1 = arith.constant 0 : i32
    return %c0_i32, %c0_i32_0 : i32, i32
  }
  func.func @transform_3(%arg0: i32) -> (i32, i32) {
    %c0_i32 = arith.constant 0 : i32
    %c0_i32_0 = arith.constant 0 : i32
    %c0_i32_1 = arith.constant 0 : i32
    return %c0_i32, %c0_i32_0 : i32, i32
  }
  func.func @transform_4(%arg0: i32) -> (i32, i32) {
    %c0_i32 = arith.constant 0 : i32
    %c0_i32_0 = arith.constant 0 : i32
    %c0_i32_1 = arith.constant 0 : i32
    return %c0_i32, %c0_i32_0 : i32, i32
  }
  func.func @transform_5(%arg0: i32) -> (i32, i32) {
    %c0_i32 = arith.constant 0 : i32
    %c0_i32_0 = arith.constant 0 : i32
    %c0_i32_1 = arith.constant 0 : i32
    return %c0_i32, %c0_i32_0 : i32, i32
  }
  func.func @transform_6(%arg0: i32) -> (i32, i32) {
    %c0_i32 = arith.constant 0 : i32
    %c0_i32_0 = arith.constant 0 : i32
    %c0_i32_1 = arith.constant 0 : i32
    return %c0_i32, %c0_i32_0 : i32, i32
  }
  func.func @transform_7(%arg0: i32) -> (i32, i32) {
    %c0_i32 = arith.constant 0 : i32
    %c0_i32_0 = arith.constant 0 : i32
    %c0_i32_1 = arith.constant 0 : i32
    return %c0_i32, %c0_i32_0 : i32, i32
  }
  func.func @transform_8(%arg0: i32) -> (i32, i32) {
    %c0_i32 = arith.constant 0 : i32
    %c0_i32_0 = arith.constant 0 : i32
    %c0_i32_1 = arith.constant 0 : i32
    return %c0_i32, %c0_i32_0 : i32, i32
  }
  func.func @transform_9(%arg0: i32) -> (i32, i32) {
    %c0_i32 = arith.constant 0 : i32
    %c0_i32_0 = arith.constant 0 : i32
    %c0_i32_1 = arith.constant 0 : i32
    return %c0_i32, %c0_i32_0 : i32, i32
  }
  func.func @transform_10(%arg0: i32) -> (i32, i32) {
    %c0_i32 = arith.constant 0 : i32
    %c0_i32_0 = arith.constant 0 : i32
    %c0_i32_1 = arith.constant 0 : i32
    return %c0_i32, %c0_i32_0 : i32, i32
  }
  func.func @transform_11(%arg0: i32) -> (i32, i32) {
    %c0_i32 = arith.constant 0 : i32
    %c0_i32_0 = arith.constant 0 : i32
    %c0_i32_1 = arith.constant 0 : i32
    return %c0_i32, %c0_i32_0 : i32, i32
  }
  func.func @transform_12(%arg0: i32) -> (i32, i32) {
    %c0_i32 = arith.constant 0 : i32
    %c0_i32_0 = arith.constant 0 : i32
    %c0_i32_1 = arith.constant 0 : i32
    return %c0_i32, %c0_i32_0 : i32, i32
  }
  func.func @transform_13(%arg0: i32) -> (i32, i32) {
    %c0_i32 = arith.constant 0 : i32
    %c0_i32_0 = arith.constant 0 : i32
    %c0_i32_1 = arith.constant 0 : i32
    return %c0_i32, %c0_i32_0 : i32, i32
  }
  func.func @transform_14(%arg0: i32) -> (i32, i32, i32) {
    %c0_i32 = arith.constant 0 : i32
    %c0_i32_0 = arith.constant 0 : i32
    %c0_i32_1 = arith.constant 0 : i32
    return %arg0, %c0_i32, %c0_i32_0 : i32, i32, i32
  }
}

</mosaic_0001>

<bundles_post_ra>
// kernel: encoder_net.1
= control target key start
LH: loop header
LB: loop body
LE: loop exit
PB: predicated region body
PF: predicated region fallthrough
CT: control target
= control target key end

     0   :  { %s1461_s29 = smov 0   ;;  %s1658_s0 = inlined_call_operand.vmem [shape: f32[2,23,4], index: 0, kind: input, shape index: {}]   ;;  %s1659_s1 = inlined_call_operand.vmem [shape: f32[2,23,23], index: 1, kind: input, shape index: {}]   ;;  %s1660_s2 = inlined_call_operand.vmem [shape: f32[4,40], index: 2, kind: input, shape index: {}]   ;;  %s1661_s3 = inlined_call_operand.vmem [shape: f32[1,40], index: 3, kind: input, shape index: {}]   ;;  %s1662_s4 = inlined_call_operand.vmem [shape: f32[1,40], index: 4, kind: input, shape index: {}]   ;;  %s1663_s5 = inlined_call_operand.vmem [shape: f32[1,40], index: 5, kind: input, shape index: {}]   ;;  %s1664_s6 = inlined_call_operand.vmem [shape: f32[40,40], index: 6, kind: input, shape index: {}]   ;;  %s1665_s7 = inlined_call_operand.vmem [shape: f32[1,40], index: 7, kind: input, shape index: {}]   ;;  %s1666_s8 = inlined_call_operand.vmem [shape: f32[1,40], index: 8, kind: input, shape index: {}]   ;;  %s1667_s9 = inlined_call_operand.vmem [shape: f32[1,40], index: 9, kind: input, shape index: {}]   ;;  %s1668_s10 = inlined_call_operand.vmem [shape: f32[40,40], index: 10, kind: input, shape index: {}]   ;;  %s1669_s11 = inlined_call_operand.vmem [shape: f32[1,40], index: 11, kind: input, shape index: {}]   ;;  %s1670_s12 = inlined_call_operand.vmem [shape: f32[1,40], index: 12, kind: input, shape index: {}]   ;;  %s1671_s13 = inlined_call_operand.vmem [shape: f32[1,40], index: 13, kind: input, shape index: {}]   ;;  %s1672_s14 = inlined_call_operand.vmem [shape: f32[2,23,40], index: 14, kind: output, shape index: {}]  }
   0x1 LB: > { %s1284_s30 = sadd.s32 4294967295, %s1384_s29   ;;  %p1288_p0 = scmp.ge.s32.totalorder %s1384_s29, 1  ;;  %s1384_s29 = sphi %s1461_s29, %s24_s29  }
   0x2   : > { %p422_p1 = scmp.lt.s32.totalorder %s1384_s29, 3 }
   0x4   : > { %p423_p2 = pnand %p1288_p0, %p422_p1 }
   0x5   : > { %p473_p3 = scmp.lt.s32.totalorder (!%p423_p2), %s1284_s30, 1 }
   0x6   : > { %426 = sbr.rel (%p423_p2) target bundleno = 2494 (0x9be), region = 76 }
   0xb   : > { %v497_v0 = vld [vmem:[%s1660_s2] sm:$0xf]  ;;  %vm508_vm0 = vcmask 1043456   ;;  %s1674_s30 = smov (!%p473_p3, %s1284_s30), 1  ;;  %vm498_vm1 = vcmask 31744   ;;  %vm710_vm2 = vcmask 1046528  }
   0xc   : > { %1292 = vmatpush.msk.msra.mxu0 %vm508_vm0, %v497_v0  ;;  %1316 = vmatpush.msk.msra.mxu1 %vm508_vm0, %v497_v0  ;;  %s1472_s17 = smul.u32 24, %s1674_s30  ;;  %v1333_v4 = vld [vmem:[%s1661_s3] ss:$0 sm:$0xff]  ;;  %vm552_vm3 = vcmask 325632   ;;  %vm545_vm4 = vcmask 326656   ;;  %vm617_vm7 = vcmask 187392  }
   0xd   : > { %v1334_v11 = vld [vmem:[%s1662_s4] ss:$0 sm:$0xff]  ;;  %vm624_vm9 = vcmask 186368  }
   0xe   : > { %s477_s20 = scalar_lea.vmem %s1658_s0, %s1472_s17  ;;  %s482_s27 = scalar_lea.vmem %s1659_s1, %s1472_s17 }
   0xf   : > { %v494_v1 = vld [vmem:[%s477_s20] sm:$0xff]  ;;  %v496_v2 = vld [vmem:[%s477_s20 + $0x10] sm:$0x7f]  ;;  %v495_v3 = vld [vmem:[%s477_s20 + $0x8] sm:$0xff]  ;;  %s487_s22 = scalar_lea.vmem %s1672_s14, %s1472_s17 }
  0x10   : > { %1293 = vmatmul.msk.f32.vlgmr.msra.gmra.mxu0 %vm498_vm1, %v494_v1  ;;  %1295 = vmatmul.msk.f32.vlgmr.msra.gmra.mxu1 %vm498_vm1, %v496_v2  ;;  %v1497_v32 = vld [vmem:[%s482_s27 + $0x8] sm:$0xff]  ;;  %v1499_v33 = vld [vmem:[%s482_s27] sm:$0xff]  ;;  %v1507_v41 = vld [vmem:[%s482_s27 + $0x10] sm:$0x7f] }
  0x11   : > { %vm492_vm5 = vcmp.gt.f32.partialorder %v1497_v32, 0.0  ;;  %vm491_vm6 = vcmp.gt.f32.partialorder %v1499_v33, 0.0  ;;  %vm493_vm8 = vcmp.gt.f32.partialorder %v1507_v41, 0.0  ;;  %v744_v1 = vld [vmem:[%s1664_s6 + $0x20] sm:$0xff]  ;;  %v743_v2 = vld [vmem:[%s1664_s6 + $0x18] sm:$0xff] }
  0x18   : > { %1294 = vmatmul.msk.f32.gmra.mxu0 %vm498_vm1, %v495_v3 }
  0x8d   : > { %v529_v5 = vpop.f32.mrf.mxu0  ;;  %v535_v6 = vpop.f32.mrf.mxu1 }
  0x8e   : > { %v544_v7 = vmul.f32 %v1333_v4, %v535_v6  ;;  %v542_v8 = vmul.f32 %v1333_v4, %v529_v5  ;;  %1296 = vmatpush.msk.msrb.mxu1 %vm710_vm2, %v535_v6  ;;  %1317 = vmatpush.msk.msra.mxu2 %vm710_vm2, %v535_v6  ;;  %v560_v12 = vmul.f32 %v1334_v11, %v529_v5 }
  0x8f   : > { %1318 = vmatpush.msk.msra.mxu3 %vm710_vm2, %v535_v6  ;;  %v562_v19 = vmul.f32 %v1334_v11, %v535_v6  ;;  %v742_v6 = vld [vmem:[%s1664_s6 + $0x10] sm:$0xff] }
  0x90   : > { %v553_v9 = vsel %vm552_vm3, %v544_v7, 0.0  ;;  %v546_v10 = vsel %vm545_vm4, %v542_v8, 0.0  ;;  %v563_v16 = vsel %vm545_vm4, %v560_v12, 0.0 }
  0x91   : > { %554 = vadd.xlane.f32.xlu1 %v553_v9  ;;  %547 = vadd.xlane.f32.xlu0 %v546_v10  ;;  %v569_v20 = vsel %vm552_vm3, %v562_v19, 0.0 }
  0x95   : > { %v532_v13 = vpop.f32.mrf.mxu0 }
  0x96   : > { %728 = vmatpush.msrb.mxu1 %v532_v13  ;;  %1319 = vmatpush.msra.mxu2 %v532_v13  ;;  %v561_v14 = vmul.f32 %v1334_v11, %v532_v13  ;;  %v543_v15 = vmul.f32 %v1333_v4, %v532_v13 }
  0x97   : > { %1320 = vmatpush.msra.mxu3 %v532_v13 }
  0x98   : > { %729 = vmatpush.msrb.mxu1 %v529_v5  ;;  %1321 = vmatpush.msra.mxu2 %v529_v5  ;;  %v566_v17 = vsel %vm545_vm4, %v561_v14, 0.0  ;;  %v549_v18 = vsel %vm545_vm4, %v543_v15, 0.0 }
  0x99   : > { %1322 = vmatpush.msra.mxu3 %v529_v5  ;;  %564 = vadd.xlane.f32.xlu1 %v563_v16 }
  0x9a   : > { %567 = vadd.xlane.f32.xlu2 %v566_v17  ;;  %550 = vadd.xlane.f32.xlu0 %v549_v18 }
  0x9b   : > { %765 = vmatpush.msrb.mxu2 %v744_v1 }
  0x9d   : > { %766 = vmatpush.msrb.mxu2 %v743_v2 }
  0x9f   : > { %767 = vmatpush.msrb.mxu2 %v742_v6 }
  0xa2   : > { %570 = vadd.xlane.f32.xlu2 %v569_v20 }
 0x104   : > { %v548_v21 = vpop.xlane.xlu0 %547  ;;  %v555_v23 = vpop.xlane.xlu1 %554 }
 0x105   : > { %572 = vxpose.xlu0.b32.start [1/3] (short) (narrow) %v548_v21, 8 }
 0x10c   : > { %v565_v27 = vpop.xlane.xlu1 %564 }
 0x10d   : > { %v551_v22 = vpop.xlane.xlu0 %550  ;;  %v568_v24 = vpop.xlane.xlu2 %567 }
 0x10e   : > { %573 = vxpose.xlu0.b32.cont [2/3] (short) (narrow) %v551_v22, 8 }
 0x115   : > { %v571_v28 = vpop.xlane.xlu2 %570 }
 0x116   : > { %574 = vxpose.xlu0.b32.end [3/3] (short) (narrow) %v555_v23, 8 }
 0x1aa   : > { %v588_v25 = vpop.trf.xlu0 }
 0x1ab   : > { %v604_v26 = vperm.slane %v588_v25, 0 }
 0x1ad   : > { %v605_v29 = vadd.f32 %v604_v26, %v565_v27  ;;  %v606_v30 = vadd.f32 %v604_v26, %v568_v24  ;;  %v607_v31 = vadd.f32 %v604_v26, %v571_v28 }
 0x1af   : > { %v609_v34 = vmul.f32 0.2, %v606_v30  ;;  %v608_v35 = vmul.f32 0.2, %v605_v29  ;;  %v610_v38 = vmul.f32 0.2, %v607_v31 }
 0x1b1   : > { %v612_v36 = vmax.f32 %v606_v30, %v609_v34  ;;  %v611_v37 = vmax.f32 %v605_v29, %v608_v35  ;;  %v613_v44 = vmax.f32 %v607_v31, %v610_v38 }
 0x1b3   : > { %v615_v39 = vsel %vm492_vm5, %v612_v36, -1e+30  ;;  %v614_v40 = vsel %vm491_vm6, %v611_v37, -1e+30  ;;  %v616_v45 = vsel %vm493_vm8, %v613_v44, -1e+30 }
 0x1b4   : > { %v621_v42 = vsel %vm617_vm7, %v615_v39, -inf  ;;  %v618_v43 = vsel %vm617_vm7, %v614_v40, -inf  ;;  %v625_v46 = vsel %vm624_vm9, %v616_v45, -inf }
 0x1b5   : > { %622 = vmax.xlane.f32.xlu2 %v621_v42  ;;  %619 = vmax.xlane.f32.xlu1 %v618_v43 }
 0x1bd   : > { %626 = vmax.xlane.f32.xlu1 %v625_v46  ;;  %v741_v46 = vld [vmem:[%s1664_s6 + $0x8] sm:$0xff] }
 0x1be   : > { %768 = vmatpush.msrb.mxu2 %v741_v46 }
 0x228   : > { %v623_v47 = vpop.xlane.xlu2 %622  ;;  %v620_v48 = vpop.xlane.xlu1 %619 }
 0x229   : > { %v629_v49 = vsub.f32 %v615_v39, %v623_v47  ;;  %v628_v50 = vsub.f32 %v614_v40, %v620_v48  ;;  %v740_v47 = vld [vmem:[%s1664_s6] sm:$0xff] }
 0x22a   : > { %769 = vmatpush.msrb.mxu2 %v740_v47  ;;  %v1335_v48 = vld [vmem:[%s1663_s5] ss:$0 sm:$0xff] }
 0x22b   : > { %v633_v51 = vmul.f32 1.442695, %v629_v49  ;;  %v631_v52 = vmul.f32 1.442695, %v628_v50 }
 0x22d   : > { %1342 = vpow2.f32 %v633_v51 }
 0x22e   : > { %1344 = vpow2.f32 %v631_v52 }
 0x230   : > { %v627_v53 = vpop.xlane.xlu1 %626 }
 0x231   : > { %v630_v54 = vsub.f32 %v616_v45, %v627_v53 }
 0x233   : > { %v1343_v55 = vpop.eup %1342  ;;  %v635_v56 = vmul.f32 1.442695, %v630_v54 }
 0x234   : > { %v1345_v57 = vpop.eup %1344  ;;  %v638_v58 = vsel %vm492_vm5, %v1343_v55, 0.0  ;;  %v1336_v55 = vld [vmem:[%s1665_s7] ss:$0 sm:$0xff] }
 0x235   : > { %1346 = vpow2.f32 %v635_v56  ;;  %v643_v59 = vsel %vm617_vm7, %v638_v58, 0.0  ;;  %v637_v60 = vsel %vm491_vm6, %v1345_v57, 0.0 }
 0x236   : > { %644 = vadd.xlane.f32.xlu1 %v643_v59  ;;  %v640_v61 = vsel %vm617_vm7, %v637_v60, 0.0  ;;  %v1337_v59 = vld [vmem:[%s1666_s8] ss:$0 sm:$0xff] }
 0x237   : > { %641 = vadd.xlane.f32.xlu2 %v640_v61 }
 0x23b   : > { %v1347_v62 = vpop.eup %1346 }
 0x23c   : > { %v1523_v63 = vsel %vm493_vm8, %v1347_v62, 0.0 }
 0x23d   : > { %v646_v0 = vsel %vm624_vm9, %v1523_v63, 0.0 }
 0x23f   : > { %647 = vadd.xlane.f32.xlu2 %v646_v0 }
 0x2a9   : > { %v645_v3 = vpop.xlane.xlu1 %644 }
 0x2aa   : > { %v642_v4 = vpop.xlane.xlu2 %641  ;;  %v650_v5 = vmax.f32 %v645_v3, 1e-30 }
 0x2ab   : > { %v649_v7 = vmax.f32 %v642_v4, 1e-30 }
 0x2ac   : > { %1348 = vrcp.f32 %v650_v5  ;;  %v678_v16 = vand.u32 2147483648, %v650_v5  ;;  %v676_v19 = vand.u32 2147483647, %v650_v5  ;;  %vm672_vm12 = vweird.f32 %v650_v5 }
 0x2ad   : > { %1350 = vrcp.f32 %v649_v7  ;;  %v663_v17 = vand.u32 2147483648, %v649_v7  ;;  %v661_v21 = vand.u32 2147483647, %v649_v7  ;;  %vm657_vm13 = vweird.f32 %v649_v7 }
 0x2ae   : > { %v679_v24 = vor.u32 1.1754944e-38, %v678_v16  ;;  %vm677_vm0 = vcmp.eq.f32.partialorder %v676_v19, 8.507059e+37 }
 0x2af   : > { %v664_v26 = vor.u32 1.1754944e-38, %v663_v17  ;;  %vm662_vm1 = vcmp.eq.f32.partialorder %v661_v21, 8.507059e+37 }
 0x2b2   : > { %v1349_v8 = vpop.eup %1348  ;;  %v648_v9 = vpop.xlane.xlu2 %647 }
 0x2b3   : > { %v1351_v10 = vpop.eup %1350  ;;  %v668_v11 = vmul.f32 %v1349_v8, %v650_v5  ;;  %v651_v12 = vmax.f32 %v648_v9, 1e-30  ;;  %vm673_vm10 = vweird.f32 %v1349_v8 }
 0x2b4   : > { %v653_v13 = vmul.f32 %v1351_v10, %v649_v7  ;;  %vm658_vm11 = vweird.f32 %v1351_v10  ;;  %vm674_vm14 = vmor %vm672_vm12, %vm673_vm10 }
 0x2b5   : > { %v669_v14 = vsub.f32 1.0, %v668_v11  ;;  %1352 = vrcp.f32 %v651_v12  ;;  %vm659_vm15 = vmor %vm657_vm13, %vm658_vm11  ;;  %v693_v37 = vand.u32 2147483648, %v651_v12  ;;  %v691_v39 = vand.u32 2147483647, %v651_v12 }
 0x2b6   : > { %v654_v15 = vsub.f32 1.0, %v653_v13  ;;  %vm687_vm11 = vweird.f32 %v651_v12 }
 0x2b7   : > { %v670_v18 = vmul.f32 %v1349_v8, %v669_v14  ;;  %v694_v42 = vor.u32 1.1754944e-38, %v693_v37  ;;  %vm692_vm13 = vcmp.eq.f32.partialorder %v691_v39, 8.507059e+37 }
 0x2b8   : > { %v655_v20 = vmul.f32 %v1351_v10, %v654_v15 }
 0x2b9   : > { %v671_v22 = vadd.f32 %v1349_v8, %v670_v18 }
 0x2ba   : > { %v656_v23 = vadd.f32 %v1351_v10, %v655_v20 }
 0x2bb   : > { %v1353_v25 = vpop.eup %1352  ;;  %v675_v27 = vsel %vm674_vm14, %v1349_v8, %v671_v22 }
 0x2bc   : > { %v683_v28 = vmul.f32 %v1353_v25, %v651_v12  ;;  %v660_v29 = vsel %vm659_vm15, %v1351_v10, %v656_v23  ;;  %v680_v30 = vsel %vm677_vm0, %v679_v24, %v675_v27  ;;  %vm688_vm10 = vweird.f32 %v1353_v25 }
 0x2bd   : > { %v665_v31 = vsel %vm662_vm1, %v664_v26, %v660_v29  ;;  %v681_v34 = vmul.f32 %v680_v30, %v638_v58  ;;  %vm689_vm12 = vmor %vm687_vm11, %vm688_vm10 }
 0x2be   : > { %v684_v35 = vsub.f32 1.0, %v683_v28  ;;  %v666_v36 = vmul.f32 %v665_v31, %v637_v60 }
 0x2bf   : > { %1298 = vmatmul.msk.f32.vlgmr.msra.gmra.mxu2 %vm617_vm7, %v681_v34 }
 0x2c0   : > { %1297 = vmatmul.msk.f32.vlgmr.msrb.gmra.mxu1 %vm617_vm7, %v666_v36  ;;  %v685_v38 = vmul.f32 %v1353_v25, %v684_v35 }
 0x2c2   : > { %v686_v40 = vadd.f32 %v1353_v25, %v685_v38 }
 0x2c4   : > { %v690_v43 = vsel %vm689_vm12, %v1353_v25, %v686_v40 }
 0x2c5   : > { %v695_v44 = vsel %vm692_vm13, %v694_v42, %v690_v43 }
 0x2c6   : > { %v696_v45 = vmul.f32 %v695_v44, %v1523_v63 }
 0x2c8   : > { %1299 = vmatmul.msk.f32.vlgmr.msra.gmra.mxu3 %vm617_vm7, %v696_v45 }
 0x33d   : > { %v731_v49 = vpop.f32.mrf.mxu1 }
 0x33e   : > { %v732_v50 = vadd.f32 %v1335_v48, %v731_v49 }
 0x340   : > { %1300 = vmatmul.msk.f32.vlgmr.msrb.gmra.mxu2 %vm545_vm4, %v732_v50 }
 0x342   : > { %v734_v51 = vpop.f32.mrf.mxu2 }
 0x343   : > { %v735_v52 = vadd.f32 %v1335_v48, %v734_v51 }
 0x348   : > { %1301 = vmatmul.msk.f32.gmra.mxu2 %vm545_vm4, %v735_v52 }
 0x34b   : > { %v737_v53 = vpop.f32.mrf.mxu3 }
 0x34c   : > { %v738_v54 = vadd.f32 %v1335_v48, %v737_v53 }
 0x350   : > { %1302 = vmatmul.msk.f32.gmra.mxu2 %vm545_vm4, %v738_v54  ;;  %v981_v54 = vld [vmem:[%s1668_s10 + $0x20] sm:$0xff] }
 0x351   : > { %1002 = vmatpush.msrb.mxu0 %v981_v54 }
 0x3c3   : > { %v771_v56 = vpop.f32.mrf.mxu2 }
 0x3c4   : > { %v784_v57 = vmul.f32 %v1336_v55, %v771_v56  ;;  %v800_v1 = vmul.f32 %v1337_v59, %v771_v56 }
 0x3c6   : > { %v787_v58 = vsel %vm545_vm4, %v784_v57, 0.0  ;;  %v803_v4 = vsel %vm545_vm4, %v800_v1, 0.0  ;;  %v979_v57 = vld [vmem:[%s1668_s10 + $0x10] sm:$0xff] }
 0x3c7   : > { %788 = vadd.xlane.f32.xlu1 %v787_v58 }
 0x3cb   : > { %v774_v60 = vpop.f32.mrf.mxu2 }
 0x3cc   : > { %v801_v61 = vmul.f32 %v1337_v59, %v774_v60  ;;  %v785_v62 = vmul.f32 %v1336_v55, %v774_v60 }
 0x3ce   : > { %v806_v63 = vsel %vm545_vm4, %v801_v61, 0.0  ;;  %v790_v0 = vsel %vm545_vm4, %v785_v62, 0.0  ;;  %v978_v61 = vld [vmem:[%s1668_s10 + $0x8] sm:$0xff] }
 0x3cf   : > { %807 = vadd.xlane.f32.xlu1 %v806_v63  ;;  %791 = vadd.xlane.f32.xlu2 %v790_v0 }
 0x3d3   : > { %v777_v2 = vpop.f32.mrf.mxu2 }
 0x3d4   : > { %v786_v3 = vmul.f32 %v1336_v55, %v777_v2  ;;  %1303 = vmatpush.msk.msrb.mxu3 %vm710_vm2, %v777_v2  ;;  %v802_v6 = vmul.f32 %v1337_v59, %v777_v2  ;;  %v980_v55 = vld [vmem:[%s1668_s10 + $0x18] sm:$0xff] }
 0x3d5   : > { %1003 = vmatpush.msrb.mxu0 %v980_v55 }
 0x3d6   : > { %965 = vmatpush.msrb.mxu3 %v774_v60  ;;  %v793_v5 = vsel %vm552_vm3, %v786_v3, 0.0  ;;  %v809_v7 = vsel %vm552_vm3, %v802_v6, 0.0 }
 0x3d7   : > { %804 = vadd.xlane.f32.xlu2 %v803_v4  ;;  %794 = vadd.xlane.f32.xlu1 %v793_v5 }
 0x3d8   : > { %966 = vmatpush.msrb.mxu3 %v771_v56  ;;  %1004 = vmatpush.msrb.mxu0 %v979_v57 }
 0x3da   : > { %1005 = vmatpush.msrb.mxu0 %v978_v61 }
 0x3df   : > { %810 = vadd.xlane.f32.xlu2 %v809_v7 }
 0x43a   : > { %v789_v8 = vpop.xlane.xlu1 %788 }
 0x43b   : > { %812 = vxpose.xlu1.b32.start [1/3] (short) (narrow) %v789_v8, 8 }
 0x442   : > { %v808_v9 = vpop.xlane.xlu1 %807  ;;  %v792_v10 = vpop.xlane.xlu2 %791 }
 0x443   : > { %813 = vxpose.xlu1.b32.cont [2/3] (short) (narrow) %v792_v10, 8 }
 0x44a   : > { %v795_v11 = vpop.xlane.xlu1 %794  ;;  %v805_v12 = vpop.xlane.xlu2 %804 }
 0x44b   : > { %814 = vxpose.xlu1.b32.end [3/3] (short) (narrow) %v795_v11, 8 }
 0x452   : > { %v811_v15 = vpop.xlane.xlu2 %810 }
 0x4df   : > { %v828_v13 = vpop.trf.xlu1 }
 0x4e0   : > { %v844_v14 = vperm.slane %v828_v13, 0 }
 0x4e2   : > { %v845_v16 = vadd.f32 %v844_v14, %v805_v12  ;;  %v846_v17 = vadd.f32 %v844_v14, %v808_v9  ;;  %v847_v18 = vadd.f32 %v844_v14, %v811_v15 }
 0x4e4   : > { %v850_v19 = vmul.f32 0.2, %v847_v18  ;;  %v848_v20 = vmul.f32 0.2, %v845_v16  ;;  %v849_v23 = vmul.f32 0.2, %v846_v17 }
 0x4e6   : > { %v853_v21 = vmax.f32 %v847_v18, %v850_v19  ;;  %v851_v22 = vmax.f32 %v845_v16, %v848_v20  ;;  %v852_v28 = vmax.f32 %v846_v17, %v849_v23 }
 0x4e8   : > { %v856_v24 = vsel %vm493_vm8, %v853_v21, -1e+30  ;;  %v854_v25 = vsel %vm491_vm6, %v851_v22, -1e+30  ;;  %v855_v29 = vsel %vm492_vm5, %v852_v28, -1e+30 }
 0x4e9   : > { %v863_v26 = vsel %vm624_vm9, %v856_v24, -inf  ;;  %v857_v27 = vsel %vm617_vm7, %v854_v25, -inf  ;;  %v860_v30 = vsel %vm617_vm7, %v855_v29, -inf }
 0x4ea   : > { %864 = vmax.xlane.f32.xlu0 %v863_v26  ;;  %858 = vmax.xlane.f32.xlu2 %v857_v27 }
 0x4f2   : > { %861 = vmax.xlane.f32.xlu2 %v860_v30 }
 0x55d   : > { %v859_v31 = vpop.xlane.xlu2 %858  ;;  %v865_v36 = vpop.xlane.xlu0 %864 }
 0x55e   : > { %v866_v34 = vsub.f32 %v854_v25, %v859_v31  ;;  %v868_v39 = vsub.f32 %v856_v24, %v865_v36  ;;  %v977_v31 = vld [vmem:[%s1668_s10] sm:$0xff] }
 0x55f   : > { %1006 = vmatpush.msrb.mxu0 %v977_v31 }
 0x560   : > { %v869_v35 = vmul.f32 1.442695, %v866_v34  ;;  %v873_v44 = vmul.f32 1.442695, %v868_v39  ;;  %v1338_v34 = vld [vmem:[%s1667_s9] ss:$0 sm:$0xff] }
 0x562   : > { %1354 = vpow2.f32 %v869_v35 }
 0x565   : > { %v862_v37 = vpop.xlane.xlu2 %861 }
 0x566   : > { %v867_v38 = vsub.f32 %v855_v29, %v862_v37 }
 0x568   : > { %v871_v40 = vmul.f32 1.442695, %v867_v38  ;;  %v1355_v42 = vpop.eup %1354 }
 0x569   : > { %v875_v43 = vsel %vm491_vm6, %v1355_v42, 0.0  ;;  %v1339_v42 = vld [vmem:[%s1669_s11] ss:$0 sm:$0xff] }
 0x56a   : > { %1356 = vpow2.f32 %v871_v40  ;;  %v878_v45 = vsel %vm617_vm7, %v875_v43, 0.0 }
 0x56b   : > { %879 = vadd.xlane.f32.xlu2 %v878_v45  ;;  %1358 = vpow2.f32 %v873_v44 }
 0x570   : > { %v1357_v46 = vpop.eup %1356 }
 0x571   : > { %v876_v47 = vsel %vm492_vm5, %v1357_v46, 0.0  ;;  %v1359_v49 = vpop.eup %1358  ;;  %v1340_v46 = vld [vmem:[%s1670_s12] ss:$0 sm:$0xff] }
 0x572   : > { %v881_v48 = vsel %vm617_vm7, %v876_v47, 0.0  ;;  %v1582_v50 = vsel %vm493_vm8, %v1359_v49, 0.0 }
 0x573   : > { %882 = vadd.xlane.f32.xlu2 %v881_v48  ;;  %v884_v51 = vsel %vm624_vm9, %v1582_v50, 0.0 }
 0x57b   : > { %885 = vadd.xlane.f32.xlu2 %v884_v51 }
 0x5de   : > { %v880_v52 = vpop.xlane.xlu2 %879 }
 0x5df   : > { %v887_v53 = vmax.f32 %v880_v52, 1e-30 }
 0x5e1   : > { %1360 = vrcp.f32 %v887_v53  ;;  %v901_v63 = vand.u32 2147483648, %v887_v53  ;;  %v899_v1 = vand.u32 2147483647, %v887_v53  ;;  %vm895_vm15 = vweird.f32 %v887_v53 }
 0x5e3   : > { %v902_v6 = vor.u32 1.1754944e-38, %v901_v63  ;;  %vm900_vm1 = vcmp.eq.f32.partialorder %v899_v1, 8.507059e+37 }
 0x5e6   : > { %v883_v56 = vpop.xlane.xlu2 %882 }
 0x5e7   : > { %v1361_v58 = vpop.eup %1360  ;;  %v888_v59 = vmax.f32 %v883_v56, 1e-30 }
 0x5e8   : > { %v891_v60 = vmul.f32 %v1361_v58, %v887_v53  ;;  %vm896_vm14 = vweird.f32 %v1361_v58 }
 0x5e9   : > { %1362 = vrcp.f32 %v888_v59  ;;  %vm897_vm0 = vmor %vm895_vm15, %vm896_vm14  ;;  %v916_v12 = vand.u32 2147483648, %v888_v59  ;;  %v914_v14 = vand.u32 2147483647, %v888_v59  ;;  %vm910_vm11 = vweird.f32 %v888_v59 }
 0x5ea   : > { %v892_v62 = vsub.f32 1.0, %v891_v60 }
 0x5eb   : > { %v917_v17 = vor.u32 1.1754944e-38, %v916_v12  ;;  %vm915_vm13 = vcmp.eq.f32.partialorder %v914_v14, 8.507059e+37 }
 0x5ec   : > { %v893_v0 = vmul.f32 %v1361_v58, %v892_v62 }
 0x5ee   : > { %v886_v2 = vpop.xlane.xlu2 %885  ;;  %v894_v3 = vadd.f32 %v1361_v58, %v893_v0 }
 0x5ef   : > { %v1363_v4 = vpop.eup %1362  ;;  %v889_v5 = vmax.f32 %v886_v2, 1e-30 }
 0x5f0   : > { %v906_v7 = vmul.f32 %v1363_v4, %v888_v59  ;;  %v898_v8 = vsel %vm897_vm0, %v1361_v58, %v894_v3  ;;  %vm911_vm10 = vweird.f32 %v1363_v4 }
 0x5f1   : > { %1364 = vrcp.f32 %v889_v5  ;;  %v903_v9 = vsel %vm900_vm1, %v902_v6, %v898_v8  ;;  %vm912_vm12 = vmor %vm910_vm11, %vm911_vm10  ;;  %v931_v23 = vand.u32 2147483648, %v889_v5  ;;  %v929_v25 = vand.u32 2147483647, %v889_v5 }
 0x5f2   : > { %v907_v10 = vsub.f32 1.0, %v906_v7  ;;  %v904_v11 = vmul.f32 %v903_v9, %v875_v43  ;;  %vm925_vm15 = vweird.f32 %v889_v5 }
 0x5f3   : > { %v932_v27 = vor.u32 1.1754944e-38, %v931_v23  ;;  %vm930_vm1 = vcmp.eq.f32.partialorder %v929_v25, 8.507059e+37 }
 0x5f4   : > { %1304 = vmatmul.msk.f32.vlgmr.msrb.gmra.mxu3 %vm617_vm7, %v904_v11  ;;  %v908_v13 = vmul.f32 %v1363_v4, %v907_v10 }
 0x5f6   : > { %v909_v15 = vadd.f32 %v1363_v4, %v908_v13 }
 0x5f7   : > { %v1365_v16 = vpop.eup %1364 }
 0x5f8   : > { %v921_v18 = vmul.f32 %v1365_v16, %v889_v5  ;;  %v913_v19 = vsel %vm912_vm12, %v1363_v4, %v909_v15  ;;  %vm926_vm14 = vweird.f32 %v1365_v16 }
 0x5f9   : > { %v918_v20 = vsel %vm915_vm13, %v917_v17, %v913_v19  ;;  %vm927_vm0 = vmor %vm925_vm15, %vm926_vm14 }
 0x5fa   : > { %v922_v21 = vsub.f32 1.0, %v921_v18  ;;  %v919_v22 = vmul.f32 %v918_v20, %v876_v47 }
 0x5fc   : > { %1305 = vmatmul.msk.f32.gmra.mxu3 %vm617_vm7, %v919_v22  ;;  %v923_v24 = vmul.f32 %v1365_v16, %v922_v21 }
 0x5fe   : > { %v924_v26 = vadd.f32 %v1365_v16, %v923_v24 }
 0x600   : > { %v928_v28 = vsel %vm927_vm0, %v1365_v16, %v924_v26 }
 0x601   : > { %v933_v29 = vsel %vm930_vm1, %v932_v27, %v928_v28 }
 0x602   : > { %v934_v30 = vmul.f32 %v933_v29, %v1582_v50 }
 0x604   : > { %1306 = vmatmul.msk.f32.gmra.mxu3 %vm617_vm7, %v934_v30 }
 0x677   : > { %v968_v35 = vpop.f32.mrf.mxu3 }
 0x678   : > { %v969_v36 = vadd.f32 %v1338_v34, %v968_v35 }
 0x67a   : > { %1307 = vmatmul.msk.f32.vlgmr.msrb.gmra.mxu0 %vm545_vm4, %v969_v36 }
 0x67f   : > { %v971_v37 = vpop.f32.mrf.mxu3 }
 0x680   : > { %v972_v38 = vadd.f32 %v1338_v34, %v971_v37 }
 0x682   : > { %1308 = vmatmul.msk.f32.gmra.mxu0 %vm545_vm4, %v972_v38 }
 0x687   : > { %v974_v39 = vpop.f32.mrf.mxu3 }
 0x688   : > { %v975_v40 = vadd.f32 %v1338_v34, %v974_v39 }
 0x68a   : > { %1309 = vmatmul.msk.f32.gmra.mxu0 %vm545_vm4, %v975_v40 }
 0x6f7   : > { %v1008_v43 = vpop.f32.mrf.mxu0 }
 0x6f8   : > { %v1021_v44 = vmul.f32 %v1339_v42, %v1008_v43  ;;  %v1037_v47 = vmul.f32 %v1340_v46, %v1008_v43 }
 0x6fa   : > { %v1024_v45 = vsel %vm545_vm4, %v1021_v44, 0.0  ;;  %v1040_v49 = vsel %vm545_vm4, %v1037_v47, 0.0 }
 0x6fb   : > { %1025 = vadd.xlane.f32.xlu2 %v1024_v45 }
 0x6ff   : > { %v1011_v48 = vpop.f32.mrf.mxu0 }
 0x700   : > { %v1022_v50 = vmul.f32 %v1339_v42, %v1011_v48  ;;  %v1038_v55 = vmul.f32 %v1340_v46, %v1011_v48 }
 0x702   : > { %v1027_v53 = vsel %vm545_vm4, %v1022_v50, 0.0  ;;  %v1043_v56 = vsel %vm545_vm4, %v1038_v55, 0.0 }
 0x703   : > { %1041 = vadd.xlane.f32.xlu2 %v1040_v49 }
 0x707   : > { %v1014_v51 = vpop.f32.mrf.mxu0 }
 0x708   : > { %v1039_v52 = vmul.f32 %v1340_v46, %v1014_v51  ;;  %1310 = vmatpush.msk.msra.mxu1 %vm710_vm2, %v1014_v51  ;;  %v1023_v57 = vmul.f32 %v1339_v42, %v1014_v51 }
 0x70a   : > { %1202 = vmatpush.msra.mxu1 %v1011_v48  ;;  %v1046_v54 = vsel %vm552_vm3, %v1039_v52, 0.0  ;;  %v1030_v58 = vsel %vm552_vm3, %v1023_v57, 0.0 }
 0x70b   : > { %1028 = vadd.xlane.f32.xlu2 %v1027_v53  ;;  %1047 = vadd.xlane.f32.xlu1 %v1046_v54 }
 0x70c   : > { %1203 = vmatpush.msra.mxu1 %v1008_v43 }
 0x713   : > { %1044 = vadd.xlane.f32.xlu2 %v1043_v56 }
 0x71b   : > { %1031 = vadd.xlane.f32.xlu2 %v1030_v58 }
 0x76e   : > { %v1026_v59 = vpop.xlane.xlu2 %1025 }
 0x76f   : > { %1049 = vxpose.xlu2.b32.start [1/3] (short) (narrow) %v1026_v59, 8 }
 0x776   : > { %v1042_v60 = vpop.xlane.xlu2 %1041 }
 0x77e   : > { %v1029_v61 = vpop.xlane.xlu2 %1028  ;;  %v1048_v2 = vpop.xlane.xlu1 %1047 }
 0x77f   : > { %1050 = vxpose.xlu2.b32.cont [2/3] (short) (narrow) %v1029_v61, 8 }
 0x786   : > { %v1045_v62 = vpop.xlane.xlu2 %1044 }
 0x78e   : > { %v1032_v63 = vpop.xlane.xlu2 %1031 }
 0x78f   : > { %1051 = vxpose.xlu2.b32.end [3/3] (short) (narrow) %v1032_v63, 8 }
 0x818   : > { %v1065_v0 = vpop.trf.xlu2 }
 0x819   : > { %v1081_v1 = vperm.slane %v1065_v0, 0 }
 0x81b   : > { %v1082_v3 = vadd.f32 %v1081_v1, %v1042_v60  ;;  %v1083_v4 = vadd.f32 %v1081_v1, %v1045_v62  ;;  %v1084_v5 = vadd.f32 %v1081_v1, %v1048_v2 }
 0x81d   : > { %v1087_v6 = vmul.f32 0.2, %v1084_v5  ;;  %v1085_v7 = vmul.f32 0.2, %v1082_v3  ;;  %v1086_v10 = vmul.f32 0.2, %v1083_v4 }
 0x81f   : > { %v1090_v8 = vmax.f32 %v1084_v5, %v1087_v6  ;;  %v1088_v9 = vmax.f32 %v1082_v3, %v1085_v7  ;;  %v1089_v15 = vmax.f32 %v1083_v4, %v1086_v10 }
 0x821   : > { %v1093_v11 = vsel %vm493_vm8, %v1090_v8, -1e+30  ;;  %v1091_v12 = vsel %vm491_vm6, %v1088_v9, -1e+30  ;;  %v1092_v16 = vsel %vm492_vm5, %v1089_v15, -1e+30 }
 0x822   : > { %v1100_v13 = vsel %vm624_vm9, %v1093_v11, -inf  ;;  %v1094_v14 = vsel %vm617_vm7, %v1091_v12, -inf  ;;  %v1097_v17 = vsel %vm617_vm7, %v1092_v16, -inf }
 0x823   : > { %1101 = vmax.xlane.f32.xlu2 %v1100_v13  ;;  %1095 = vmax.xlane.f32.xlu0 %v1094_v14 }
 0x82b   : > { %1098 = vmax.xlane.f32.xlu0 %v1097_v17 }
 0x896   : > { %v1096_v18 = vpop.xlane.xlu0 %1095  ;;  %v1102_v21 = vpop.xlane.xlu2 %1101 }
 0x897   : > { %v1103_v19 = vsub.f32 %v1091_v12, %v1096_v18  ;;  %v1105_v24 = vsub.f32 %v1093_v11, %v1102_v21  ;;  %v1341_v11 = vld [vmem:[%s1671_s13] ss:$0 sm:$0xff] }
 0x899   : > { %v1106_v20 = vmul.f32 1.442695, %v1103_v19  ;;  %v1110_v28 = vmul.f32 1.442695, %v1105_v24 }
 0x89b   : > { %1366 = vpow2.f32 %v1106_v20 }
 0x89e   : > { %v1099_v22 = vpop.xlane.xlu0 %1098 }
 0x89f   : > { %v1104_v23 = vsub.f32 %v1092_v16, %v1099_v22 }
 0x8a1   : > { %v1108_v25 = vmul.f32 1.442695, %v1104_v23  ;;  %v1367_v26 = vpop.eup %1366 }
 0x8a2   : > { %v1112_v27 = vsel %vm491_vm6, %v1367_v26, 0.0 }
 0x8a3   : > { %1368 = vpow2.f32 %v1108_v25  ;;  %v1115_v29 = vsel %vm617_vm7, %v1112_v27, 0.0 }
 0x8a4   : > { %1116 = vadd.xlane.f32.xlu0 %v1115_v29  ;;  %1370 = vpow2.f32 %v1110_v28 }
 0x8a9   : > { %v1369_v30 = vpop.eup %1368 }
 0x8aa   : > { %v1113_v31 = vsel %vm492_vm5, %v1369_v30, 0.0  ;;  %v1371_v35 = vpop.eup %1370 }
 0x8ab   : > { %v1118_v34 = vsel %vm617_vm7, %v1113_v31, 0.0  ;;  %v1114_v36 = vsel %vm493_vm8, %v1371_v35, 0.0 }
 0x8ac   : > { %1119 = vadd.xlane.f32.xlu0 %v1118_v34  ;;  %v1121_v37 = vsel %vm624_vm9, %v1114_v36, 0.0 }
 0x8b4   : > { %1122 = vadd.xlane.f32.xlu0 %v1121_v37 }
 0x917   : > { %v1117_v33 = vpop.xlane.xlu0 %1116 }
 0x918   : > { %v1124_v38 = vmax.f32 %v1117_v33, 1e-30 }
 0x91a   : > { %1372 = vrcp.f32 %v1124_v38  ;;  %v1138_v44 = vand.u32 2147483648, %v1124_v38  ;;  %v1136_v46 = vand.u32 2147483647, %v1124_v38  ;;  %vm1132_vm5 = vweird.f32 %v1124_v38 }
 0x91c   : > { %v1139_v49 = vor.u32 1.1754944e-38, %v1138_v44  ;;  %vm1137_vm8 = vcmp.eq.f32.partialorder %v1136_v46, 8.507059e+37 }
 0x91f   : > { %v1120_v39 = vpop.xlane.xlu0 %1119 }
 0x920   : > { %v1373_v40 = vpop.eup %1372  ;;  %v1125_v42 = vmax.f32 %v1120_v39, 1e-30 }
 0x921   : > { %v1128_v43 = vmul.f32 %v1373_v40, %v1124_v38  ;;  %vm1133_vm2 = vweird.f32 %v1373_v40 }
 0x922   : > { %1374 = vrcp.f32 %v1125_v42  ;;  %vm1134_vm6 = vmor %vm1132_vm5, %vm1133_vm2  ;;  %v1153_v56 = vand.u32 2147483648, %v1125_v42  ;;  %v1151_v58 = vand.u32 2147483647, %v1125_v42  ;;  %vm1147_vm10 = vweird.f32 %v1125_v42 }
 0x923   : > { %v1129_v32 = vsub.f32 1.0, %v1128_v43 }
 0x924   : > { %v1154_v61 = vor.u32 1.1754944e-38, %v1153_v56  ;;  %vm1152_vm12 = vcmp.eq.f32.partialorder %v1151_v58, 8.507059e+37 }
 0x925   : > { %v1130_v45 = vmul.f32 %v1373_v40, %v1129_v32 }
 0x927   : > { %v1131_v47 = vadd.f32 %v1373_v40, %v1130_v45  ;;  %v1123_v41 = vpop.xlane.xlu0 %1122 }
 0x928   : > { %v1375_v48 = vpop.eup %1374  ;;  %v1126_v50 = vmax.f32 %v1123_v41, 1e-30 }
 0x929   : > { %v1143_v51 = vmul.f32 %v1375_v48, %v1125_v42  ;;  %v1135_v52 = vsel %vm1134_vm6, %v1373_v40, %v1131_v47  ;;  %vm1148_vm9 = vweird.f32 %v1375_v48 }
 0x92a   : > { %1376 = vrcp.f32 %v1126_v50  ;;  %v1140_v53 = vsel %vm1137_vm8, %v1139_v49, %v1135_v52  ;;  %vm1149_vm11 = vmor %vm1147_vm10, %vm1148_vm9  ;;  %v1168_v3 = vand.u32 2147483648, %v1126_v50  ;;  %v1166_v5 = vand.u32 2147483647, %v1126_v50 }
 0x92b   : > { %v1144_v54 = vsub.f32 1.0, %v1143_v51  ;;  %v1141_v55 = vmul.f32 %v1140_v53, %v1112_v27  ;;  %vm1162_vm14 = vweird.f32 %v1126_v50 }
 0x92c   : > { %v1169_v7 = vor.u32 1.1754944e-38, %v1168_v3  ;;  %vm1167_vm0 = vcmp.eq.f32.partialorder %v1166_v5, 8.507059e+37 }
 0x92d   : > { %1311 = vmatmul.msk.f32.vlgmr.msra.gmra.mxu1 %vm617_vm7, %v1141_v55  ;;  %v1145_v57 = vmul.f32 %v1375_v48, %v1144_v54 }
 0x92f   : > { %v1146_v59 = vadd.f32 %v1375_v48, %v1145_v57 }
 0x930   : > { %v1377_v60 = vpop.eup %1376 }
 0x931   : > { %v1158_v62 = vmul.f32 %v1377_v60, %v1126_v50  ;;  %v1150_v63 = vsel %vm1149_vm11, %v1375_v48, %v1146_v59  ;;  %vm1163_vm13 = vweird.f32 %v1377_v60 }
 0x932   : > { %v1155_v0 = vsel %vm1152_vm12, %v1154_v61, %v1150_v63  ;;  %vm1164_vm15 = vmor %vm1162_vm14, %vm1163_vm13 }
 0x933   : > { %v1159_v1 = vsub.f32 1.0, %v1158_v62  ;;  %v1156_v2 = vmul.f32 %v1155_v0, %v1113_v31 }
 0x935   : > { %1312 = vmatmul.msk.f32.gmra.mxu1 %vm617_vm7, %v1156_v2  ;;  %v1160_v4 = vmul.f32 %v1377_v60, %v1159_v1 }
 0x937   : > { %v1161_v6 = vadd.f32 %v1377_v60, %v1160_v4 }
 0x939   : > { %v1165_v8 = vsel %vm1164_vm15, %v1377_v60, %v1161_v6 }
 0x93a   : > { %v1170_v9 = vsel %vm1167_vm0, %v1169_v7, %v1165_v8 }
 0x93b   : > { %v1171_v10 = vmul.f32 %v1170_v9, %v1114_v36 }
 0x93d   : > { %1313 = vmatmul.msk.f32.gmra.mxu1 %vm617_vm7, %v1171_v10 }
 0x9aa   : > { %v1205_v12 = vpop.f32.mrf.mxu1 }
 0x9ab   : > { %v1206_v13 = vadd.f32 %v1341_v11, %v1205_v12 }
 0x9ad   : > { %1214 = vst.msk [vmem:[%s487_s22] sm:$0xff] %vm545_vm4, %v1206_v13 }
 0x9b2   : > { %v1208_v14 = vpop.f32.mrf.mxu1 }
 0x9b3   : > { %v1209_v15 = vadd.f32 %v1341_v11, %v1208_v14 }
 0x9b5   : > { %1215 = vst.msk [vmem:[%s487_s22 + $0x8] sm:$0xff] %vm545_vm4, %v1209_v15 }
 0x9ba   : > { %v1211_v16 = vpop.f32.mrf.mxu1 }
 0x9bb   : > { %v1212_v17 = vadd.f32 %v1341_v11, %v1211_v16 }
 0x9bd   : > { %1216 = vst.msk [vmem:[%s487_s22 + $0x10] sm:$0x7f] %vm552_vm3, %v1212_v17 }
 0x9be PF: > { %s24_s29 = sadd.s32 1, %s1384_s29  }
 0x9bf   : > { %p21_p4 = scmp.ge.s32.totalorder %s24_s29, 4  }
 0x9c1   :  { %23 = sbr.rel (!%p21_p4) target bundleno = 1 (0x1), region = 109 }

</bundles_post_ra>
